<compile_context>
chip_gen: v7x
topology: tpu7x:2x2x1
jax: 0.10.0
libtpu: 0.0.40
codegen_flags: <defaults>
</compile_context>

<pallas_src>
import jax
import jax.numpy as jnp
from jax.experimental import pallas as pl
from jax.experimental.pallas import tpu as pltpu


def _round_up(x, m):
    return ((x + m - 1) // m) * m


C_IN = 1024                              # input channels to Q
C_MID = 128                              # channels after self.conv
N_DISC, N_MU, N_VAR = 10, 2, 2
HEAD_PAD = 128                           # lane-padded packed-head width
MU_LO = N_DISC                           # 10
VAR_LO = N_DISC + N_MU                   # 12
VAR_HI = VAR_LO + N_VAR                  # 14


# --------------------------- single fused kernel ------------------------------
def _q_fused_kernel(x_ref, w_ref, b_ref, o_ref):
    # x_ref : (tm, 1024)  f32    activations (channels on the lane axis)
    # w_ref : (1024, 128) bf16   folded weight  W1^T @ [W_disc|W_mu|W_var|0]
    # b_ref : (1, 128)    f32    packed head biases (zeros in pad columns)
    # o_ref : (tm, 128)   f32    lane-dense [disc(10) | mu(2) | exp(var)(2) | pad]
    x_bf = x_ref[...].astype(jnp.bfloat16)           # in-VMEM cast, VPU filler
    z = jnp.dot(x_bf, w_ref[...], preferred_element_type=jnp.float32) + b_ref[...]

    # epilogue: exp() only on the var columns [12, 14).
    # (1, 128) mask = one vreg; exp argument zeroed outside var cols so the
    # dead branch can never produce inf.
    col = jax.lax.broadcasted_iota(jnp.int32, (1, HEAD_PAD), 1)
    is_var = (col >= VAR_LO) & (col < VAR_HI)
    e = jnp.exp(jnp.where(is_var, z, 0.0))
    o_ref[...] = jnp.where(is_var, e, z)


# -------------------- one-time weight packing (outside jit path) --------------
def pack_q_params(params):
    """PyTorch-layout params -> folded bf16 weight slab + packed f32 bias row."""
    # conv_w: (128, 1024, 1, 1)  bias=False
    # disc_w: (10, 128, 1, 1), disc_b: (10,)
    # mu_w:   (2, 128, 1, 1),  mu_b:   (2,)
    # var_w:  (2, 128, 1, 1),  var_b:  (2,)
    w1 = params["conv_w"].reshape(C_MID, C_IN).astype(jnp.float32)        # (128, 1024)

    wh = jnp.zeros((C_MID, HEAD_PAD), jnp.float32)
    wh = wh.at[:, :N_DISC].set(params["disc_w"].reshape(N_DISC, C_MID).T.astype(jnp.float32))
    wh = wh.at[:, MU_LO:VAR_LO].set(params["mu_w"].reshape(N_MU, C_MID).T.astype(jnp.float32))
    wh = wh.at[:, VAR_LO:VAR_HI].set(params["var_w"].reshape(N_VAR, C_MID).T.astype(jnp.float32))

    # Fold the two linear layers exactly in f32 (bn/lReLU are unused in forward),
    # then cast the composed weight to bf16 once.
    w_fused = (w1.T @ wh).astype(jnp.bfloat16)                            # (1024, 128)

    bh = jnp.zeros((1, HEAD_PAD), jnp.float32)
    bh = bh.at[0, :N_DISC].set(params["disc_b"].astype(jnp.float32))
    bh = bh.at[0, MU_LO:VAR_LO].set(params["mu_b"].astype(jnp.float32))
    bh = bh.at[0, VAR_LO:VAR_HI].set(params["var_b"].astype(jnp.float32))

    return {"w_fused": w_fused, "bh": bh}


# ------------------------------ tiling policy ---------------------------------
def _pick_tiling(n_rows):
    """Row-padded extent Mp and row-tile tm (both multiples of 8)."""
    Mp = _round_up(max(n_rows, 8), 8)
    MAX_TM = 1024
    if Mp <= 512:
        tm = Mp                       # tiny / moderate batch: one grid step
    else:
        # >= 2 grid steps so v7x's two TensorCores ("parallel" axis) both work;
        # cap the tile at 1024 rows (4 MiB f32 x-block, well inside VMEM).
        tm = min(MAX_TM, _round_up((Mp + 1) // 2, 8))
        Mp = _round_up(Mp, tm)
    return Mp, tm


# --------------------------------- forward ------------------------------------
def q_forward(x_nchw, packed):
    """x_nchw: (N, 1024, 1, 1). Returns (disc_logits (N,10), mu (N,2), var (N,2))."""
    N = x_nchw.shape[0]
    x2d = x_nchw.reshape(N, C_IN).astype(jnp.float32)

    Mp, tm = _pick_tiling(N)
    if Mp != N:
        x2d = jnp.pad(x2d, ((0, Mp - N), (0, 0)))     # pad rows only when needed

    cost = pl.CostEstimate(
        flops=2 * Mp * C_IN * HEAD_PAD,
        transcendentals=Mp * HEAD_PAD,
        bytes_accessed=Mp * C_IN * 4 + C_IN * HEAD_PAD * 2
        + HEAD_PAD * 4 + Mp * HEAD_PAD * 4,
    )

    out = pl.pallas_call(
        _q_fused_kernel,
        out_shape=jax.ShapeDtypeStruct((Mp, HEAD_PAD), jnp.float32),
        grid_spec=pltpu.PrefetchScalarGridSpec(
            num_scalar_prefetch=0,
            grid=(Mp // tm,),
            in_specs=[
                pl.BlockSpec((tm, C_IN), lambda i: (i, 0)),
                pl.BlockSpec((C_IN, HEAD_PAD), lambda i: (0, 0)),
                pl.BlockSpec((1, HEAD_PAD), lambda i: (0, 0)),
            ],
            out_specs=pl.BlockSpec((tm, HEAD_PAD), lambda i: (i, 0)),
        ),
        compiler_params=pltpu.CompilerParams(
            dimension_semantics=("parallel",)),
        cost_estimate=cost,
    )(x2d, packed["w_fused"], packed["bh"])

    disc_logits = out[:N, :N_DISC]            # (N, 10)
    mu = out[:N, MU_LO:VAR_LO]                # (N, 2)
    var = out[:N, VAR_LO:VAR_HI]              # (N, 2), exp already applied in-kernel
    return disc_logits, mu, var


# ------------------------------ pure-JAX reference ----------------------------
def _q_ref(x_nchw, params):
    N = x_nchw.shape[0]
    x = x_nchw.reshape(N, C_IN).astype(jnp.float32)
    y = x @ params["conv_w"].reshape(C_MID, C_IN).T
    disc = y @ params["disc_w"].reshape(N_DISC, C_MID).T + params["disc_b"]
    mu = y @ params["mu_w"].reshape(N_MU, C_MID).T + params["mu_b"]
    var = jnp.exp(y @ params["var_w"].reshape(N_VAR, C_MID).T + params["var_b"])
    return disc, mu, var


if __name__ == "__main__":
    key = jax.random.PRNGKey(0)
    k1, k2, k3, k4, kb1, kb2, kb3, kx = jax.random.split(key, 8)

    # PyTorch Conv2d weight layout: (out_channels, in_channels, kH, kW)
    params = {
        "conv_w": jax.random.normal(k1, (C_MID, C_IN, 1, 1), jnp.float32) * 0.02,
        "disc_w": jax.random.normal(k2, (N_DISC, C_MID, 1, 1), jnp.float32) * 0.05,
        "disc_b": jax.random.normal(kb1, (N_DISC,), jnp.float32) * 0.05,
        "mu_w":   jax.random.normal(k3, (N_MU, C_MID, 1, 1), jnp.float32) * 0.05,
        "mu_b":   jax.random.normal(kb2, (N_MU,), jnp.float32) * 0.05,
        "var_w":  jax.random.normal(k4, (N_VAR, C_MID, 1, 1), jnp.float32) * 0.05,
        "var_b":  jax.random.normal(kb3, (N_VAR,), jnp.float32) * 0.05,
    }
    packed = pack_q_params(params)            # one-time pre-pack (outside jit path)

    # Q input in InfoGAN: discriminator body features, (batch, 1024, 1, 1)
    x = jax.random.normal(kx, (2, C_IN, 1, 1), jnp.float32)

    disc, mu, var = jax.jit(q_forward)(x, packed)
    jax.block_until_ready((disc, mu, var))

    assert disc.shape == (2, N_DISC), disc.shape
    assert mu.shape == (2, N_MU), mu.shape
    assert var.shape == (2, N_VAR), var.shape
    assert bool(jnp.all(jnp.isfinite(disc)))
    assert bool(jnp.all(jnp.isfinite(mu)))
    assert bool(jnp.all(jnp.isfinite(var)))
    assert bool(jnp.all(var > 0.0))           # exp() range

    # tolerance check against the f32 reference (bf16 MXU path -> loose bounds)
    d_ref, m_ref, v_ref = _q_ref(x, params)
    assert bool(jnp.all(jnp.abs(disc - d_ref) <= 0.05 + 0.05 * jnp.abs(d_ref)))
    assert bool(jnp.all(jnp.abs(mu - m_ref) <= 0.05 + 0.05 * jnp.abs(m_ref)))
    assert bool(jnp.all(jnp.abs(var - v_ref) <= 0.05 + 0.05 * jnp.abs(v_ref)))

    print("KERNEL_OK")
</pallas_src>

<mosaic_0001>
module attributes {stable_mosaic.version = 11 : i64} {
  func.func @_q_fused_kernel(%arg0: i32, %arg1: memref<8x1024xf32, #tpu.memory_space<vmem>>, %arg2: memref<1024x128xbf16, #tpu.memory_space<vmem>>, %arg3: memref<1x128xf32, #tpu.memory_space<vmem>>, %arg4: memref<8x128xf32, #tpu.memory_space<vmem>>) attributes {dimension_semantics = [#tpu.dimension_semantics<parallel>], iteration_bounds = array<i64: 1>, scalar_prefetch = 0 : i64, scratch_operands = 0 : i64, tpu.core_type = #tpu.core_type<tc>, window_params = [{transform_indices = @transform_0, window_bounds = array<i64: 8, 1024>}, {pipeline_mode = #tpu.pipeline_mode<synchronous>, transform_indices = @transform_1, window_bounds = array<i64: 1024, 128>}, {pipeline_mode = #tpu.pipeline_mode<synchronous>, transform_indices = @transform_2, window_bounds = array<i64: 1, 128>}, {transform_indices = @transform_3, window_bounds = array<i64: 8, 128>}]} {
    %c0 = arith.constant 0 : index
    %c0_0 = arith.constant 0 : index
    %0 = vector.load %arg1[%c0, %c0_0] : memref<8x1024xf32, #tpu.memory_space<vmem>>, vector<8x1024xf32>
    %1 = arith.truncf %0 : vector<8x1024xf32> to vector<8x1024xbf16>
    %c0_1 = arith.constant 0 : index
    %c0_2 = arith.constant 0 : index
    %2 = vector.load %arg2[%c0_1, %c0_2] : memref<1024x128xbf16, #tpu.memory_space<vmem>>, vector<1024x128xbf16>
    %cst = arith.constant dense<0.000000e+00> : vector<8x128xf32>
    %3 = tpu.matmul %1, %2, %cst {dimension_numbers = #tpu.dot_dimension_numbers<[1], [0], [0], [1], [0, 0, 1, 1], [], []>} : vector<8x1024xbf16>, vector<1024x128xbf16>, vector<8x128xf32> -> vector<8x128xf32>
    %c0_3 = arith.constant 0 : index
    %c0_4 = arith.constant 0 : index
    %4 = vector.load %arg3[%c0_3, %c0_4] : memref<1x128xf32, #tpu.memory_space<vmem>>, vector<1x128xf32>
    %5 = vector.broadcast %4 : vector<1x128xf32> to vector<8x128xf32>
    %6 = arith.addf %3, %5 : vector<8x128xf32>
    %7 = tpu.iota {dimensions = array<i32: 1>} : vector<1x128xi32>
    %c12_i32 = arith.constant 12 : i32
    %8 = vector.broadcast %c12_i32 : i32 to vector<1x128xi32>
    %9 = arith.cmpi sge, %7, %8 : vector<1x128xi32>
    %c14_i32 = arith.constant 14 : i32
    %10 = vector.broadcast %c14_i32 : i32 to vector<1x128xi32>
    %11 = arith.cmpi slt, %7, %10 : vector<1x128xi32>
    %12 = arith.andi %9, %11 : vector<1x128xi1>
    %cst_5 = arith.constant 0.000000e+00 : f32
    %13 = vector.shape_cast %12 : vector<1x128xi1> to vector<1x128xi1>
    %14 = vector.broadcast %13 : vector<1x128xi1> to vector<8x128xi1>
    %15 = vector.broadcast %cst_5 : f32 to vector<8x128xf32>
    %16 = arith.select %14, %6, %15 : vector<8x128xi1>, vector<8x128xf32>
    %17 = math.exp %16 : vector<8x128xf32>
    %18 = vector.shape_cast %12 : vector<1x128xi1> to vector<1x128xi1>
    %19 = vector.broadcast %18 : vector<1x128xi1> to vector<8x128xi1>
    %20 = arith.select %19, %17, %6 : vector<8x128xi1>, vector<8x128xf32>
    %c0_6 = arith.constant 0 : index
    %c0_7 = arith.constant 0 : index
    %21 = vector.load %arg4[%c0_6, %c0_7] : memref<8x128xf32, #tpu.memory_space<vmem>>, vector<8x128xf32>
    tpu.vector_store %arg4[%c0_6, %c0_7], %20 {strides = array<i32>} : memref<8x128xf32, #tpu.memory_space<vmem>>, vector<8x128xf32>,
    return
  }
  func.func @transform_0(%arg0: i32) -> (i32, i32) {
    %c0_i32 = arith.constant 0 : i32
    %c0_i32_0 = arith.constant 0 : i32
    return %arg0, %c0_i32 : i32, i32
  }
  func.func @transform_1(%arg0: i32) -> (i32, i32) {
    %c0_i32 = arith.constant 0 : i32
    %c0_i32_0 = arith.constant 0 : i32
    %c0_i32_1 = arith.constant 0 : i32
    return %c0_i32, %c0_i32_0 : i32, i32
  }
  func.func @transform_2(%arg0: i32) -> (i32, i32) {
    %c0_i32 = arith.constant 0 : i32
    %c0_i32_0 = arith.constant 0 : i32
    %c0_i32_1 = arith.constant 0 : i32
    return %c0_i32, %c0_i32_0 : i32, i32
  }
  func.func @transform_3(%arg0: i32) -> (i32, i32) {
    %c0_i32 = arith.constant 0 : i32
    %c0_i32_0 = arith.constant 0 : i32
    return %arg0, %c0_i32 : i32, i32
  }
}

</mosaic_0001>

<bundles_post_ra>
// kernel: q_forward.1
= control target key start
LH: loop header
LB: loop body
LE: loop exit
PB: predicated region body
PF: predicated region fallthrough
CT: control target
= control target key end

     0   :  { %8 = vsyncpa [#allocation3], 0  ;;  %s987_s12 = smov [#allocation2]   ;;  %s1052_s0 = inlined_call_operand.vmem [shape: f32[8,1024], index: 0, kind: input, shape index: {}]   ;;  %s1053_s1 = inlined_call_operand.hbm [shape: bf16[1024,128], index: 1, kind: input, shape index: {}]   ;;  %s1054_s2 = inlined_call_operand.vmem [shape: f32[1,128], index: 2, kind: input, shape index: {}]   ;;  %s1055_s3 = inlined_call_operand.vmem [shape: f32[8,128], index: 3, kind: output, shape index: {}]  }
   0x1   :  { %s16_s13 = sshll.u32 %s987_s12, 4  ;;  %s963_s16 = scalar_lea.hbm %s1053_s1, 8192  ;;  %s17_s13 = int_to_ptr.vmem [resolvable:$true] %s16_s13 }
   0x2   :  { %p964_p0 = scmp.ne.s32.totalorder %s1053_s1, %s963_s16  ;;  %p967_p1 = scmp.lt.u32.totalorder %s963_s16, %s1053_s1 }
   0x4   :  { %p969_p2 = pnand %p967_p1, %p964_p0 }
   0x6   :  { %972 = shalt.err (!%p969_p2)
}
   0x7   :  { %s973_s21 = scalar_lea.vmem %s17_s13, 8192  ;;  %p978_p4 = scmp.lt.s32.totalorder %s17_s13, %s17_s13 }
   0x8   :  { %p974_p3 = scmp.ne.s32.totalorder %s17_s13, %s973_s21  ;;  %p979_p5 = scmp.lt.s32.totalorder %s973_s21, %s973_s21 }
   0xa   :  { %p980_p6 = por %p979_p5, %p978_p4 }
   0xc   :  { %p981_p7 = pnand %p980_p6, %p974_p3 }
   0xe   :  { %984 = shalt.err (!%p981_p7)
}
   0xf   :  { %s988_s22 = smov 64   ;;  %s989_s23 = smov 4  }
  0x10   :  { %22 = dma.hbm_to_vmem [thread:$0]  %s1053_s1, 8192, %s17_s13, [#allocation3], %s988_s22, %s988_s22, %s989_s23  }
  0x11   :  { %985 = dma.done.wait [#allocation3], 8192  }
  0x12   :  { %986 = vsyncadd [#allocation3], 4294959104  ;;  %v897_v0 = vld [vmem:[#allocation2 + $0x40] sm:$0xff]   ;;  %v901_v4 = vld [vmem:[#allocation2 + $0x48] sm:$0xff]  }
  0x13   :  { %v898_v1 = vld [vmem:[#allocation2 + $0xc0] sm:$0xff]   ;;  %806 = vmatprep.subr.bf16.mxu0 %v897_v0  ;;  %v902_v5 = vld [vmem:[#allocation2 + $0xc8] sm:$0xff]   ;;  %v905_v8 = vld [vmem:[#allocation2 + $0x50] sm:$0xff]  }
  0x14   :  { %v899_v2 = vld [vmem:[#allocation2] sm:$0xff]   ;;  %828 = vmatprep.subr.bf16.mxu1 %v898_v1  ;;  %v903_v6 = vld [vmem:[#allocation2 + $0x8] sm:$0xff]   ;;  %v906_v9 = vld [vmem:[#allocation2 + $0xd0] sm:$0xff]  }
  0x15   :  { %v900_v3 = vld [vmem:[#allocation2 + $0x80] sm:$0xff]   ;;  %807 = vmatpush3.bf16.msra.mxu0 %v899_v2  ;;  %v904_v7 = vld [vmem:[#allocation2 + $0x88] sm:$0xff]   ;;  %v907_v10 = vld [vmem:[#allocation2 + $0x10] sm:$0xff]  }
  0x16   :  { %829 = vmatpush3.bf16.msra.mxu1 %v900_v3  ;;  %808 = vmatprep.subr.bf16.mxu0 %v901_v4  ;;  %v908_v11 = vld [vmem:[#allocation2 + $0x90] sm:$0xff]   ;;  %v909_v12 = vld [vmem:[#allocation2 + $0x58] sm:$0xff]   ;;  %v913_v16 = vld [vmem:[#allocation2 + $0x60] sm:$0xff]  }
  0x17   :  { %830 = vmatprep.subr.bf16.mxu1 %v902_v5  ;;  %v910_v13 = vld [vmem:[#allocation2 + $0xd8] sm:$0xff]   ;;  %v914_v17 = vld [vmem:[#allocation2 + $0xe0] sm:$0xff]   ;;  %v917_v20 = vld [vmem:[#allocation2 + $0x68] sm:$0xff]  }
  0x18   :  { %v911_v14 = vld [vmem:[#allocation2 + $0x18] sm:$0xff]   ;;  %v915_v18 = vld [vmem:[#allocation2 + $0x20] sm:$0xff]   ;;  %v918_v21 = vld [vmem:[#allocation2 + $0xe8] sm:$0xff]  }
  0x19   :  { %809 = vmatpush3.bf16.msra.mxu0 %v903_v6  ;;  %v912_v15 = vld [vmem:[#allocation2 + $0x98] sm:$0xff]   ;;  %v916_v19 = vld [vmem:[#allocation2 + $0xa0] sm:$0xff]   ;;  %v919_v22 = vld [vmem:[#allocation2 + $0x28] sm:$0xff]  }
  0x1a   :  { %831 = vmatpush3.bf16.msra.mxu1 %v904_v7  ;;  %810 = vmatprep.subr.bf16.mxu0 %v905_v8  ;;  %v920_v23 = vld [vmem:[#allocation2 + $0xa8] sm:$0xff]   ;;  %v921_v24 = vld [vmem:[#allocation2 + $0x70] sm:$0xff]   ;;  %v925_v28 = vld [vmem:[#allocation2 + $0x78] sm:$0xff]  }
  0x1b   :  { %832 = vmatprep.subr.bf16.mxu1 %v906_v9  ;;  %v922_v25 = vld [vmem:[#allocation2 + $0xf0] sm:$0xff]   ;;  %v926_v29 = vld [vmem:[#allocation2 + $0xf8] sm:$0xff]   ;;  %v30_v32 = vld [vmem:[%s1052_s0 + $0x8] sm:$0xff] }
  0x1c   :  { %v923_v26 = vld [vmem:[#allocation2 + $0x30] sm:$0xff]   ;;  %v927_v30 = vld [vmem:[#allocation2 + $0x38] sm:$0xff]   ;;  %v29_v34 = vld [vmem:[%s1052_s0] sm:$0xff]  ;;  %v38_v35 = vpack.c.bf16 %v30_v32, %v30_v32 }
  0x1d   :  { %811 = vmatpush3.bf16.msra.mxu0 %v907_v10  ;;  %v924_v27 = vld [vmem:[#allocation2 + $0xb0] sm:$0xff]   ;;  %v928_v31 = vld [vmem:[#allocation2 + $0xb8] sm:$0xff]   ;;  %v37_v37 = vpack.c.bf16 %v29_v34, %v29_v34  ;;  %v929_v40 = vld [vmem:[#allocation2 + $0x140] sm:$0xff]  }
  0x1e   :  { %833 = vmatpush3.bf16.msra.mxu1 %v908_v11  ;;  %812 = vmatprep.subr.bf16.mxu0 %v909_v12  ;;  %v32_v33 = vld [vmem:[%s1052_s0 + $0x18] sm:$0xff]  ;;  %v31_v38 = vld [vmem:[%s1052_s0 + $0x10] sm:$0xff]  ;;  %v930_v41 = vld [vmem:[#allocation2 + $0x1c0] sm:$0xff]  }
  0x1f   :  { %834 = vmatprep.subr.bf16.mxu1 %v910_v13  ;;  %v40_v36 = vpack.c.bf16 %v32_v33, %v32_v33  ;;  %v39_v39 = vpack.c.bf16 %v31_v38, %v31_v38  ;;  %596 = vmatprep.mubr.bf16.mxu0 %v38_v35  ;;  %v931_v42 = vld [vmem:[#allocation2 + $0x100] sm:$0xff]   ;;  %v933_v44 = vld [vmem:[#allocation2 + $0x148] sm:$0xff]   ;;  %v937_v48 = vld [vmem:[#allocation2 + $0x150] sm:$0xff]  }
  0x20   :  { %v932_v43 = vld [vmem:[#allocation2 + $0x180] sm:$0xff]   ;;  %v934_v45 = vld [vmem:[#allocation2 + $0x1c8] sm:$0xff]   ;;  %v938_v49 = vld [vmem:[#allocation2 + $0x1d0] sm:$0xff]  }
  0x21   :  { %813 = vmatpush3.bf16.msra.mxu0 %v911_v14  ;;  %636 = vmatprep.mubr.bf16.mxu1 %v40_v36  ;;  %v935_v46 = vld [vmem:[#allocation2 + $0x108] sm:$0xff]   ;;  %v939_v50 = vld [vmem:[#allocation2 + $0x110] sm:$0xff]   ;;  %v941_v52 = vld [vmem:[#allocation2 + $0x158] sm:$0xff]  }
  0x22   :  { %835 = vmatpush3.bf16.msra.mxu1 %v912_v15  ;;  %814 = vmatprep.subr.bf16.mxu0 %v913_v16  ;;  %v936_v47 = vld [vmem:[#allocation2 + $0x188] sm:$0xff]   ;;  %v940_v51 = vld [vmem:[#allocation2 + $0x190] sm:$0xff]   ;;  %v942_v53 = vld [vmem:[#allocation2 + $0x1d8] sm:$0xff]  }
  0x23   :  { %836 = vmatprep.subr.bf16.mxu1 %v914_v17  ;;  %v943_v54 = vld [vmem:[#allocation2 + $0x118] sm:$0xff]   ;;  %v945_v56 = vld [vmem:[#allocation2 + $0x160] sm:$0xff]   ;;  %v949_v60 = vld [vmem:[#allocation2 + $0x168] sm:$0xff]  }
  0x24   :  { %v944_v55 = vld [vmem:[#allocation2 + $0x198] sm:$0xff]   ;;  %v946_v57 = vld [vmem:[#allocation2 + $0x1e0] sm:$0xff]   ;;  %v950_v61 = vld [vmem:[#allocation2 + $0x1e8] sm:$0xff]  }
  0x25   :  { %815 = vmatpush3.bf16.msra.mxu0 %v915_v18  ;;  %v947_v58 = vld [vmem:[#allocation2 + $0x120] sm:$0xff]   ;;  %v951_v62 = vld [vmem:[#allocation2 + $0x128] sm:$0xff]   ;;  %v953_v0 = vld [vmem:[#allocation2 + $0x170] sm:$0xff]  }
  0x26   :  { %837 = vmatpush3.bf16.msra.mxu1 %v916_v19  ;;  %816 = vmatprep.subr.bf16.mxu0 %v917_v20  ;;  %v948_v59 = vld [vmem:[#allocation2 + $0x1a0] sm:$0xff]   ;;  %v952_v63 = vld [vmem:[#allocation2 + $0x1a8] sm:$0xff]   ;;  %v954_v1 = vld [vmem:[#allocation2 + $0x1f0] sm:$0xff]  }
  0x27   :  { %838 = vmatprep.subr.bf16.mxu1 %v918_v21  ;;  %v955_v2 = vld [vmem:[#allocation2 + $0x130] sm:$0xff]   ;;  %v957_v4 = vld [vmem:[#allocation2 + $0x178] sm:$0xff]   ;;  %v34_v8 = vld [vmem:[%s1052_s0 + $0x28] sm:$0xff] }
  0x28   :  { %v956_v3 = vld [vmem:[#allocation2 + $0x1b0] sm:$0xff]   ;;  %v958_v5 = vld [vmem:[#allocation2 + $0x1f8] sm:$0xff]   ;;  %v42_v10 = vpack.c.bf16 %v34_v8, %v34_v8  ;;  %v33_v12 = vld [vmem:[%s1052_s0 + $0x20] sm:$0xff] }
  0x29   :  { %817 = vmatpush3.bf16.msra.mxu0 %v919_v22  ;;  %v959_v6 = vld [vmem:[#allocation2 + $0x138] sm:$0xff]   ;;  %v35_v13 = vld [vmem:[%s1052_s0 + $0x30] sm:$0xff]  ;;  %v41_v14 = vpack.c.bf16 %v33_v12, %v33_v12  ;;  %v741_v18 = vld [vmem:[%s1054_s2] ss:$0 sm:$0xff] }
  0x2a   :  { %839 = vmatpush3.bf16.msra.mxu1 %v920_v23  ;;  %818 = vmatprep.subr.bf16.mxu0 %v921_v24  ;;  %v960_v7 = vld [vmem:[#allocation2 + $0x1b8] sm:$0xff]   ;;  %v43_v15 = vpack.c.bf16 %v35_v13, %v35_v13 }
  0x2b   :  { %840 = vmatprep.subr.bf16.mxu1 %v922_v25  ;;  %v36_v9 = vld [vmem:[%s1052_s0 + $0x38] sm:$0xff] }
  0x2c   :  { %v44_v11 = vpack.c.bf16 %v36_v9, %v36_v9 }
  0x2d   :  { %819 = vmatpush3.bf16.msra.mxu0 %v923_v26 }
  0x2e   :  { %841 = vmatpush3.bf16.msra.mxu1 %v924_v27  ;;  %820 = vmatprep.subr.bf16.mxu0 %v925_v28 }
  0x2f   :  { %842 = vmatprep.subr.bf16.mxu1 %v926_v29  ;;  %v724_v29 = vlaneseq }
  0x31   :  { %821 = vmatpush3.bf16.msra.mxu0 %v927_v30  ;;  %v725_v30 = vand.u32 127, %v724_v29 }
  0x32   :  { %843 = vmatpush3.bf16.msra.mxu1 %v928_v31  ;;  %850 = vmatprep.subr.bf16.mxu0 %v929_v40 }
  0x33   :  { %872 = vmatprep.subr.bf16.mxu1 %v930_v41  ;;  %vm726_vm0 = vcmp.ge.s32.totalorder %v725_v30, 12  ;;  %vm727_vm1 = vcmp.lt.s32.totalorder %v725_v30, 14 }
  0x34   :  { %597 = vmatmul.mubr.bf16.vlgmr.msra.gmra.mrb[0].mxu0 %v37_v37  ;;  %vm728_vm2 = vmand %vm726_vm0, %vm727_vm1 }
  0x35   :  { %637 = vmatmul.mubr.bf16.vlgmr.msra.gmra.mrb[0].mxu1 %v39_v39  ;;  %851 = vmatpush3.bf16.msra.mxu0 %v931_v42 }
  0x36   :  { %873 = vmatpush3.bf16.msra.mxu1 %v932_v43  ;;  %852 = vmatprep.subr.bf16.mxu0 %v933_v44 }
  0x37   :  { %874 = vmatprep.subr.bf16.mxu1 %v934_v45  ;;  %676 = vmatprep.mubr.bf16.mxu0 %v42_v10 }
  0x38   :  { %716 = vmatprep.mubr.bf16.mxu1 %v44_v11 }
  0x39   :  { %853 = vmatpush3.bf16.msra.mxu0 %v935_v46 }
  0x3a   :  { %875 = vmatpush3.bf16.msra.mxu1 %v936_v47  ;;  %854 = vmatprep.subr.bf16.mxu0 %v937_v48 }
  0x3b   :  { %876 = vmatprep.subr.bf16.mxu1 %v938_v49 }
  0x3d   :  { %855 = vmatpush3.bf16.msra.mxu0 %v939_v50 }
  0x3e   :  { %877 = vmatpush3.bf16.msra.mxu1 %v940_v51  ;;  %856 = vmatprep.subr.bf16.mxu0 %v941_v52 }
  0x3f   :  { %878 = vmatprep.subr.bf16.mxu1 %v942_v53 }
  0x41   :  { %857 = vmatpush3.bf16.msra.mxu0 %v943_v54 }
  0x42   :  { %879 = vmatpush3.bf16.msra.mxu1 %v944_v55  ;;  %858 = vmatprep.subr.bf16.mxu0 %v945_v56 }
  0x43   :  { %880 = vmatprep.subr.bf16.mxu1 %v946_v57 }
  0x45   :  { %859 = vmatpush3.bf16.msra.mxu0 %v947_v58 }
  0x46   :  { %881 = vmatpush3.bf16.msra.mxu1 %v948_v59  ;;  %860 = vmatprep.subr.bf16.mxu0 %v949_v60 }
  0x47   :  { %882 = vmatprep.subr.bf16.mxu1 %v950_v61 }
  0x49   :  { %861 = vmatpush3.bf16.msra.mxu0 %v951_v62 }
  0x4a   :  { %883 = vmatpush3.bf16.msra.mxu1 %v952_v63  ;;  %862 = vmatprep.subr.bf16.mxu0 %v953_v0 }
  0x4b   :  { %884 = vmatprep.subr.bf16.mxu1 %v954_v1 }
  0x4d   :  { %863 = vmatpush3.bf16.msra.mxu0 %v955_v2 }
  0x4e   :  { %885 = vmatpush3.bf16.msra.mxu1 %v956_v3  ;;  %864 = vmatprep.subr.bf16.mxu0 %v957_v4 }
  0x4f   :  { %886 = vmatprep.subr.bf16.mxu1 %v958_v5 }
  0x51   :  { %865 = vmatpush3.bf16.msra.mxu0 %v959_v6 }
  0x52   :  { %887 = vmatpush3.bf16.msra.mxu1 %v960_v7 }
  0x54   :  { %677 = vmatmul.mubr.bf16.vlgmr.msra.gmra.mrb[4].mxu0 %v41_v14 }
  0x55   :  { %717 = vmatmul.mubr.bf16.vlgmr.msra.gmra.mrb[4].mxu1 %v43_v15 }
 0x107   :  { %v822_v16 = vpop.f32.mrb[0].mxu0 }
 0x108   :  { %v844_v17 = vpop.f32.mrb[0].mxu1  ;;  %v823_v19 = vpop.f32.mrb[1].mxu0 }
 0x109   :  { %v845_v20 = vpop.f32.mrb[1].mxu1  ;;  %v824_v21 = vadd.f32 %v823_v19, %v822_v16  ;;  %v825_v23 = vpop.f32.mrb[2].mxu0 }
 0x10a   :  { %v846_v22 = vadd.f32 %v845_v20, %v844_v17  ;;  %v847_v24 = vpop.f32.mrb[2].mxu1  ;;  %v826_v25 = vpop.f32.mrb[3].mxu0 }
 0x10b   :  { %v848_v26 = vpop.f32.mrb[3].mxu1  ;;  %v599_v27 = vadd.f32 %v824_v21, %v741_v18 }
 0x10d   :  { %v639_v28 = vadd.f32 %v846_v22, %v599_v27 }
 0x127   :  { %v866_v31 = vpop.f32.mrb[4].mxu0 }
 0x128   :  { %v888_v32 = vpop.f32.mrb[4].mxu1  ;;  %v867_v33 = vpop.f32.mrb[5].mxu0 }
 0x129   :  { %v868_v34 = vadd.f32 %v867_v33, %v866_v31  ;;  %v889_v35 = vpop.f32.mrb[5].mxu1  ;;  %v869_v36 = vpop.f32.mrb[6].mxu0 }
 0x12a   :  { %v890_v37 = vadd.f32 %v889_v35, %v888_v32  ;;  %v891_v38 = vpop.f32.mrb[6].mxu1  ;;  %v870_v39 = vpop.f32.mrb[7].mxu0 }
 0x12b   :  { %v679_v40 = vadd.f32 %v868_v34, %v639_v28  ;;  %v892_v41 = vpop.f32.mrb[7].mxu1 }
 0x12d   :  { %v719_v42 = vadd.f32 %v890_v37, %v679_v40 }
 0x12f   :  { %v731_v43 = vsel %vm728_vm2, %v719_v42, 0.0 }
 0x130   :  { %v732_v44 = vmul.f32 1.442695, %v731_v43 }
 0x132   :  { %961 = vpow2.f32 %v732_v44 }
 0x13c   :  { %v962_v45 = vpop.eup %961 }
 0x13d   :  { %v734_v46 = vsel %vm728_vm2, %v962_v45, %v719_v42 }
 0x13e   :  { %735 = vst [vmem:[%s1055_s3] sm:$0xff] %v734_v46 }
 0x13f   :  { %740 = vsyncpa [#allocation3], 1 }

</bundles_post_ra>
